<compile_context>
chip_gen: v7x
topology: tpu7x:2x2x1
jax: 0.10.0
libtpu: 0.0.40
codegen_flags: <defaults>
</compile_context>

<pallas_src>
import math

import jax
import jax.numpy as jnp
from jax.experimental import pallas as pl
from jax.experimental.pallas import tpu as pltpu

VOCAB = 30522
EPS = 1e-12


def _round_up(x, m):
    return ((x + m - 1) // m) * m


def embedding_distill_forward(token_ids, segs, word_table, pos_table, type_table,
                              gamma, beta, position_ids=None, *, token_tile=512):
    B, S = token_ids.shape
    H = word_table.shape[1]
    T = B * S

    # ---- choose token tile & positional-embedding handling -------------------
    if position_ids is None:
        # Default arange positions repeat with period S in flattened (B*S) order.
        # Make tt a multiple of lcm(S, 8): every tile then sees the SAME positional
        # slab -> one constant (tt, H) VMEM-resident vectorized add.
        L = math.lcm(S, 8)
        tt = max(L, (token_tile // L) * L)
        tt = min(tt, _round_up(T, L))
        t_pad = _round_up(T, tt)
        pos_arr = jnp.tile(pos_table[:S].astype(jnp.float32), (tt // S, 1))  # (tt, H)
        pos_spec = pl.BlockSpec((tt, H), lambda i, wid: (0, 0))              # constant block
    else:
        # Custom position ids: gather in the wrapper (pos table is small) and stream
        # per-tile (tt, H) blocks through the pipeline.
        tt = min(_round_up(token_tile, 8), _round_up(T, 8))
        t_pad = _round_up(T, tt)
        pid_flat = jnp.pad(position_ids.reshape(-1).astype(jnp.int32), (0, t_pad - T))
        pos_arr = jnp.take(pos_table, pid_flat, axis=0).astype(jnp.float32)  # (t_pad, H)
        pos_spec = pl.BlockSpec((tt, H), lambda i, wid: (i, 0))

    # ---- flatten / pad ids ----------------------------------------------------
    word_ids = jnp.pad(token_ids.reshape(-1).astype(jnp.int32), (0, t_pad - T))
    seg_col = jnp.pad(segs.reshape(-1).astype(jnp.int32),
                      (0, t_pad - T)).reshape(t_pad, 1)

    gamma2 = gamma.reshape(1, H).astype(jnp.float32)
    beta2 = beta.reshape(1, H).astype(jnp.float32)

    out_dtype = word_table.dtype
    n_chunks = tt // 8

    # ---- kernel ---------------------------------------------------------------
    def kernel(wid_ref,                 # (t_pad,) int32 word ids, SMEM scalar prefetch
               seg_ref,                 # (tt, 1) int32 block
               pos_ref,                 # (tt, H) f32 positional block (slab or flat)
               word_ref,                # (V, H) word table, fully resident in VMEM
               type_ref,                # (2, H) token-type table, VMEM
               gamma_ref, beta_ref,     # (1, H) LayerNorm params
               out_ref,                 # (tt, H) output tile
               acc_ref):                # (tt, H) f32 scratch
        t0 = pl.program_id(0) * tt

        # Word-row gather, 8 rows per step: eight single-row dynamic loads are
        # concatenated into one (8, H) value and written with ONE aligned,
        # unmasked full-sublane store.  Pad-only chunks of the last tile skipped.
        def gather8(c, carry):
            base = pl.multiple_of(c * 8, 8)

            @pl.when(t0 + base < T)
            def _():
                rows = [word_ref[pl.ds(wid_ref[t0 + base + u], 1), :]
                        for u in range(8)]
                acc_ref[pl.ds(base, 8), :] = (
                    jnp.concatenate(rows, axis=0).astype(jnp.float32))

            return carry

        jax.lax.fori_loop(0, n_chunks, gather8, 0)

        # Vectorized positional add + token-type select (only 2 types).
        emb = acc_ref[...] + pos_ref[...]
        is0 = jnp.broadcast_to(seg_ref[...] == 0, (tt, H))
        type0 = jnp.broadcast_to(type_ref[0:1, :].astype(jnp.float32), (tt, H))
        type1 = jnp.broadcast_to(type_ref[1:2, :].astype(jnp.float32), (tt, H))
        emb = emb + jnp.where(is0, type0, type1)

        # LayerNorm in f32, eps = 1e-12.
        mean = jnp.mean(emb, axis=-1, keepdims=True)
        cen = emb - mean
        var = jnp.mean(cen * cen, axis=-1, keepdims=True)
        normed = cen * jax.lax.rsqrt(var + EPS)
        out_ref[...] = (normed * gamma_ref[...] + beta_ref[...]).astype(out_ref.dtype)
        # TODO(synk): dropout(p=0.1) omitted (identity in eval mode).

    vmem_full = pl.BlockSpec(memory_space=pltpu.MemorySpace.VMEM)
    grid_spec = pltpu.PrefetchScalarGridSpec(
        num_scalar_prefetch=1,                                   # word ids only
        grid=(t_pad // tt,),
        in_specs=[pl.BlockSpec((tt, 1), lambda i, wid: (i, 0)),  # segs column
                  pos_spec,                                      # positional block
                  vmem_full,                                     # word table (resident)
                  vmem_full,                                     # type table
                  vmem_full,                                     # gamma
                  vmem_full],                                    # beta
        out_specs=pl.BlockSpec((tt, H), lambda i, wid: (i, 0)),
        scratch_shapes=[pltpu.VMEM((tt, H), jnp.float32)],
    )

    table_bytes = int(word_table.size * word_table.dtype.itemsize
                      + pos_arr.size * 4
                      + type_table.size * type_table.dtype.itemsize)
    cost = pl.CostEstimate(
        flops=int(t_pad * H * 8),
        transcendentals=int(t_pad),
        bytes_accessed=int(table_bytes
                           + t_pad * H * jnp.dtype(out_dtype).itemsize
                           + t_pad * 8),
    )

    out = pl.pallas_call(
        kernel,
        out_shape=jax.ShapeDtypeStruct((t_pad, H), out_dtype),
        grid_spec=grid_spec,
        compiler_params=pltpu.CompilerParams(
            dimension_semantics=("parallel",),       # independent tiles -> both TCs
            vmem_limit_bytes=40 * 1024 * 1024,       # room for the 15.6 MiB word table
        ),
        cost_estimate=cost,
    )(word_ids, seg_col, pos_arr, word_table, type_table, gamma2, beta2)

    return out[:T].reshape(B, S, H)


def _reference(token_ids, segs, word_table, pos_table, type_table, gamma, beta,
               position_ids=None):
    B, S = token_ids.shape
    if position_ids is None:
        position_ids = jnp.broadcast_to(jnp.arange(S, dtype=jnp.int32)[None, :], (B, S))
    emb = (jnp.take(word_table, token_ids, axis=0)
           + jnp.take(pos_table, position_ids, axis=0)
           + jnp.take(type_table, segs, axis=0))
    mean = jnp.mean(emb, axis=-1, keepdims=True)
    var = jnp.mean((emb - mean) ** 2, axis=-1, keepdims=True)
    normed = (emb - mean) / jnp.sqrt(var + EPS)
    return normed * gamma + beta


if __name__ == "__main__":
    # args: ext_hidden_size=128, max_pos=512
    H = 128
    MAX_POS = 512
    B, S = 2, 8

    key = jax.random.PRNGKey(0)
    k_w, k_p, k_t, k_x, k_s, k_pid = jax.random.split(key, 6)

    # Parameter init matching the module (normal(0,1) embeddings; LN weight=1, bias=0).
    word_table = jax.random.normal(k_w, (VOCAB, H), dtype=jnp.float32)
    pos_table = jax.random.normal(k_p, (MAX_POS, H), dtype=jnp.float32)
    type_table = jax.random.normal(k_t, (2, H), dtype=jnp.float32)
    gamma = jnp.ones((H,), dtype=jnp.float32)
    beta = jnp.zeros((H,), dtype=jnp.float32)

    # Example inputs.
    token_ids = jax.random.randint(k_x, (B, S), 0, VOCAB, dtype=jnp.int32)
    segs = jax.random.randint(k_s, (B, S), 0, 2, dtype=jnp.int32)

    # 1) Default position ids (constant positional-slab fast path).
    out = embedding_distill_forward(token_ids, segs, word_table, pos_table,
                                    type_table, gamma, beta)
    out = jax.block_until_ready(out)
    ref = _reference(token_ids, segs, word_table, pos_table, type_table, gamma, beta)
    assert out.shape == (B, S, H)
    assert jnp.allclose(out, ref, atol=1e-4, rtol=1e-4), "mismatch vs reference (default pos)"

    # 2) Custom position ids (streamed positional-block fallback path).
    custom_pid = jax.random.randint(k_pid, (B, S), 0, MAX_POS, dtype=jnp.int32)
    out2 = embedding_distill_forward(token_ids, segs, word_table, pos_table,
                                     type_table, gamma, beta, position_ids=custom_pid)
    out2 = jax.block_until_ready(out2)
    ref2 = _reference(token_ids, segs, word_table, pos_table, type_table, gamma, beta,
                      position_ids=custom_pid)
    assert jnp.allclose(out2, ref2, atol=1e-4, rtol=1e-4), "mismatch vs reference (custom pos)"

    print("KERNEL_OK")
</pallas_src>

<mosaic_0001>
module attributes {stable_mosaic.version = 11 : i64} {
  func.func @kernel(%arg0: i32, %arg1: memref<16xi32, #tpu.memory_space<smem>>, %arg2: memref<16x1xi32, #tpu.memory_space<vmem>>, %arg3: memref<16x128xf32, #tpu.memory_space<vmem>>, %arg4: memref<30522x128xf32, #tpu.memory_space<vmem>>, %arg5: memref<2x128xf32, #tpu.memory_space<vmem>>, %arg6: memref<1x128xf32, #tpu.memory_space<vmem>>, %arg7: memref<1x128xf32, #tpu.memory_space<vmem>>, %arg8: memref<16x128xf32, #tpu.memory_space<vmem>>, %arg9: memref<16x128xf32, #tpu.memory_space<vmem>>) attributes {dimension_semantics = [#tpu.dimension_semantics<parallel>], iteration_bounds = array<i64: 1>, scalar_prefetch = 1 : i64, scratch_operands = 1 : i64, tpu.core_type = #tpu.core_type<tc>, window_params = [{transform_indices = @transform_0, window_bounds = array<i64: 16, 1>}, {pipeline_mode = #tpu.pipeline_mode<synchronous>, transform_indices = @transform_1, window_bounds = array<i64: 16, 128>}, {pipeline_mode = #tpu.pipeline_mode<synchronous>, transform_indices = @transform_2, window_bounds = array<i64: 30522, 128>}, {pipeline_mode = #tpu.pipeline_mode<synchronous>, transform_indices = @transform_3, window_bounds = array<i64: 2, 128>}, {pipeline_mode = #tpu.pipeline_mode<synchronous>, transform_indices = @transform_4, window_bounds = array<i64: 1, 128>}, {pipeline_mode = #tpu.pipeline_mode<synchronous>, transform_indices = @transform_5, window_bounds = array<i64: 1, 128>}, {transform_indices = @transform_6, window_bounds = array<i64: 16, 128>}]} {
    %c16_i32 = arith.constant 16 : i32
    %0 = arith.muli %arg0, %c16_i32 : i32
    %c0_i32 = arith.constant 0 : i32
    %c2_i32 = arith.constant 2 : i32
    %1 = arith.addi %c0_i32, %c2_i32 : i32
    %c1_i32 = arith.constant 1 : i32
    scf.for %arg10 = %c0_i32 to %1 step %c1_i32  : i32 {
      %c8_i32 = arith.constant 8 : i32
      %41 = arith.muli %arg10, %c8_i32 : i32
      %42 = tpu.assume_multiple %41, 8 : i32
      %43 = arith.addi %0, %42 : i32
      %c16_i32_20 = arith.constant 16 : i32
      %44 = arith.cmpi slt, %43, %c16_i32_20 : i32
      %45 = arith.extui %44 : i1 to i32
      %c0_i32_21 = arith.constant 0 : i32
      %46 = arith.cmpi ne, %45, %c0_i32_21 : i32
      scf.if %46 {
        %47 = arith.addi %0, %42 : i32
        %c0_i32_22 = arith.constant 0 : i32
        %48 = arith.addi %47, %c0_i32_22 : i32
        %49 = arith.index_cast %48 : i32 to index
        %50 = memref.load %arg1[%49] : memref<16xi32, #tpu.memory_space<smem>>
        %51 = arith.index_cast %50 : i32 to index
        %c0_23 = arith.constant 0 : index
        %52 = vector.load %arg4[%51, %c0_23] : memref<30522x128xf32, #tpu.memory_space<vmem>>, vector<1x128xf32>
        %53 = arith.addi %0, %42 : i32
        %c1_i32_24 = arith.constant 1 : i32
        %54 = arith.addi %53, %c1_i32_24 : i32
        %55 = arith.index_cast %54 : i32 to index
        %56 = memref.load %arg1[%55] : memref<16xi32, #tpu.memory_space<smem>>
        %57 = arith.index_cast %56 : i32 to index
        %c0_25 = arith.constant 0 : index
        %58 = vector.load %arg4[%57, %c0_25] : memref<30522x128xf32, #tpu.memory_space<vmem>>, vector<1x128xf32>
        %59 = arith.addi %0, %42 : i32
        %c2_i32_26 = arith.constant 2 : i32
        %60 = arith.addi %59, %c2_i32_26 : i32
        %61 = arith.index_cast %60 : i32 to index
        %62 = memref.load %arg1[%61] : memref<16xi32, #tpu.memory_space<smem>>
        %63 = arith.index_cast %62 : i32 to index
        %c0_27 = arith.constant 0 : index
        %64 = vector.load %arg4[%63, %c0_27] : memref<30522x128xf32, #tpu.memory_space<vmem>>, vector<1x128xf32>
        %65 = arith.addi %0, %42 : i32
        %c3_i32 = arith.constant 3 : i32
        %66 = arith.addi %65, %c3_i32 : i32
        %67 = arith.index_cast %66 : i32 to index
        %68 = memref.load %arg1[%67] : memref<16xi32, #tpu.memory_space<smem>>
        %69 = arith.index_cast %68 : i32 to index
        %c0_28 = arith.constant 0 : index
        %70 = vector.load %arg4[%69, %c0_28] : memref<30522x128xf32, #tpu.memory_space<vmem>>, vector<1x128xf32>
        %71 = arith.addi %0, %42 : i32
        %c4_i32 = arith.constant 4 : i32
        %72 = arith.addi %71, %c4_i32 : i32
        %73 = arith.index_cast %72 : i32 to index
        %74 = memref.load %arg1[%73] : memref<16xi32, #tpu.memory_space<smem>>
        %75 = arith.index_cast %74 : i32 to index
        %c0_29 = arith.constant 0 : index
        %76 = vector.load %arg4[%75, %c0_29] : memref<30522x128xf32, #tpu.memory_space<vmem>>, vector<1x128xf32>
        %77 = arith.addi %0, %42 : i32
        %c5_i32 = arith.constant 5 : i32
        %78 = arith.addi %77, %c5_i32 : i32
        %79 = arith.index_cast %78 : i32 to index
        %80 = memref.load %arg1[%79] : memref<16xi32, #tpu.memory_space<smem>>
        %81 = arith.index_cast %80 : i32 to index
        %c0_30 = arith.constant 0 : index
        %82 = vector.load %arg4[%81, %c0_30] : memref<30522x128xf32, #tpu.memory_space<vmem>>, vector<1x128xf32>
        %83 = arith.addi %0, %42 : i32
        %c6_i32 = arith.constant 6 : i32
        %84 = arith.addi %83, %c6_i32 : i32
        %85 = arith.index_cast %84 : i32 to index
        %86 = memref.load %arg1[%85] : memref<16xi32, #tpu.memory_space<smem>>
        %87 = arith.index_cast %86 : i32 to index
        %c0_31 = arith.constant 0 : index
        %88 = vector.load %arg4[%87, %c0_31] : memref<30522x128xf32, #tpu.memory_space<vmem>>, vector<1x128xf32>
        %89 = arith.addi %0, %42 : i32
        %c7_i32 = arith.constant 7 : i32
        %90 = arith.addi %89, %c7_i32 : i32
        %91 = arith.index_cast %90 : i32 to index
        %92 = memref.load %arg1[%91] : memref<16xi32, #tpu.memory_space<smem>>
        %93 = arith.index_cast %92 : i32 to index
        %c0_32 = arith.constant 0 : index
        %94 = vector.load %arg4[%93, %c0_32] : memref<30522x128xf32, #tpu.memory_space<vmem>>, vector<1x128xf32>
        %95 = tpu.concatenate %52, %58, %64, %70, %76, %82, %88, %94 in 0 : vector<1x128xf32>, vector<1x128xf32>, vector<1x128xf32>, vector<1x128xf32>, vector<1x128xf32>, vector<1x128xf32>, vector<1x128xf32>, vector<1x128xf32> -> vector<8x128xf32>
        %96 = arith.index_cast %42 : i32 to index
        %c0_33 = arith.constant 0 : index
        %97 = vector.load %arg9[%96, %c0_33] : memref<16x128xf32, #tpu.memory_space<vmem>>, vector<8x128xf32>
        tpu.vector_store %arg9[%96, %c0_33], %95 {strides = array<i32>} : memref<16x128xf32, #tpu.memory_space<vmem>>, vector<8x128xf32>,
      } else {
      }
    }
    %c2_i32_0 = arith.constant 2 : i32
    %c0 = arith.constant 0 : index
    %c0_1 = arith.constant 0 : index
    %2 = vector.load %arg9[%c0, %c0_1] : memref<16x128xf32, #tpu.memory_space<vmem>>, vector<16x128xf32>
    %c0_2 = arith.constant 0 : index
    %c0_3 = arith.constant 0 : index
    %3 = vector.load %arg3[%c0_2, %c0_3] : memref<16x128xf32, #tpu.memory_space<vmem>>, vector<16x128xf32>
    %4 = arith.addf %2, %3 : vector<16x128xf32>
    %c0_4 = arith.constant 0 : index
    %c0_5 = arith.constant 0 : index
    %5 = vector.load %arg2[%c0_4, %c0_5] : memref<16x1xi32, #tpu.memory_space<vmem>>, vector<16x1xi32>
    %c0_i32_6 = arith.constant 0 : i32
    %6 = vector.broadcast %c0_i32_6 : i32 to vector<16x1xi32>
    %7 = arith.cmpi eq, %5, %6 : vector<16x1xi32>
    %8 = vector.shape_cast %7 : vector<16x1xi1> to vector<16x1xi1>
    %9 = vector.broadcast %8 : vector<16x1xi1> to vector<16x128xi1>
    %c0_7 = arith.constant 0 : index
    %c0_8 = arith.constant 0 : index
    %10 = vector.load %arg5[%c0_7, %c0_8] : memref<2x128xf32, #tpu.memory_space<vmem>>, vector<1x128xf32>
    %11 = vector.shape_cast %10 : vector<1x128xf32> to vector<1x128xf32>
    %12 = vector.broadcast %11 : vector<1x128xf32> to vector<16x128xf32>
    %c1 = arith.constant 1 : index
    %c0_9 = arith.constant 0 : index
    %13 = vector.load %arg5[%c1, %c0_9] : memref<2x128xf32, #tpu.memory_space<vmem>>, vector<1x128xf32>
    %14 = vector.shape_cast %13 : vector<1x128xf32> to vector<1x128xf32>
    %15 = vector.broadcast %14 : vector<1x128xf32> to vector<16x128xf32>
    %16 = arith.select %9, %12, %15 : vector<16x128xi1>, vector<16x128xf32>
    %17 = arith.addf %4, %16 : vector<16x128xf32>
    %cst = arith.constant dense<0.000000e+00> : vector<16xf32>
    %18 = vector.multi_reduction <add>, %17, %cst [1] : vector<16x128xf32> to vector<16xf32>
    %19 = vector.shape_cast %18 : vector<16xf32> to vector<16x1xf32>
    %cst_10 = arith.constant 1.280000e+02 : f32
    %20 = vector.broadcast %cst_10 : f32 to vector<16x1xf32>
    %21 = arith.divf %19, %20 : vector<16x1xf32>
    %22 = vector.broadcast %21 : vector<16x1xf32> to vector<16x128xf32>
    %23 = arith.subf %17, %22 : vector<16x128xf32>
    %24 = arith.mulf %23, %23 : vector<16x128xf32>
    %cst_11 = arith.constant dense<0.000000e+00> : vector<16xf32>
    %25 = vector.multi_reduction <add>, %24, %cst_11 [1] : vector<16x128xf32> to vector<16xf32>
    %26 = vector.shape_cast %25 : vector<16xf32> to vector<16x1xf32>
    %cst_12 = arith.constant 1.280000e+02 : f32
    %27 = vector.broadcast %cst_12 : f32 to vector<16x1xf32>
    %28 = arith.divf %26, %27 : vector<16x1xf32>
    %cst_13 = arith.constant 9.99999996E-13 : f32
    %29 = vector.broadcast %cst_13 : f32 to vector<16x1xf32>
    %30 = arith.addf %28, %29 : vector<16x1xf32>
    %31 = math.rsqrt %30 : vector<16x1xf32>
    %32 = vector.broadcast %31 : vector<16x1xf32> to vector<16x128xf32>
    %33 = arith.mulf %23, %32 : vector<16x128xf32>
    %c0_14 = arith.constant 0 : index
    %c0_15 = arith.constant 0 : index
    %34 = vector.load %arg6[%c0_14, %c0_15] : memref<1x128xf32, #tpu.memory_space<vmem>>, vector<1x128xf32>
    %35 = vector.broadcast %34 : vector<1x128xf32> to vector<16x128xf32>
    %36 = arith.mulf %33, %35 : vector<16x128xf32>
    %c0_16 = arith.constant 0 : index
    %c0_17 = arith.constant 0 : index
    %37 = vector.load %arg7[%c0_16, %c0_17] : memref<1x128xf32, #tpu.memory_space<vmem>>, vector<1x128xf32>
    %38 = vector.broadcast %37 : vector<1x128xf32> to vector<16x128xf32>
    %39 = arith.addf %36, %38 : vector<16x128xf32>
    %c0_18 = arith.constant 0 : index
    %c0_19 = arith.constant 0 : index
    %40 = vector.load %arg8[%c0_18, %c0_19] : memref<16x128xf32, #tpu.memory_space<vmem>>, vector<16x128xf32>
    tpu.vector_store %arg8[%c0_18, %c0_19], %39 {strides = array<i32>} : memref<16x128xf32, #tpu.memory_space<vmem>>, vector<16x128xf32>,
    return
  }
  func.func @transform_0(%arg0: i32, %arg1: memref<16xi32, #tpu.memory_space<smem>>) -> (i32, i32) {
    %c0_i32 = arith.constant 0 : i32
    %c0_i32_0 = arith.constant 0 : i32
    return %arg0, %c0_i32 : i32, i32
  }
  func.func @transform_1(%arg0: i32, %arg1: memref<16xi32, #tpu.memory_space<smem>>) -> (i32, i32) {
    %c0_i32 = arith.constant 0 : i32
    %c0_i32_0 = arith.constant 0 : i32
    %c0_i32_1 = arith.constant 0 : i32
    return %c0_i32, %c0_i32_0 : i32, i32
  }
  func.func @transform_2(%arg0: i32, %arg1: memref<16xi32, #tpu.memory_space<smem>>) -> (i32, i32) {
    %c0_i32 = arith.constant 0 : i32
    %c0_i32_0 = arith.constant 0 : i32
    %c0_i32_1 = arith.constant 0 : i32
    return %c0_i32, %c0_i32_0 : i32, i32
  }
  func.func @transform_3(%arg0: i32, %arg1: memref<16xi32, #tpu.memory_space<smem>>) -> (i32, i32) {
    %c0_i32 = arith.constant 0 : i32
    %c0_i32_0 = arith.constant 0 : i32
    %c0_i32_1 = arith.constant 0 : i32
    return %c0_i32, %c0_i32_0 : i32, i32
  }
  func.func @transform_4(%arg0: i32, %arg1: memref<16xi32, #tpu.memory_space<smem>>) -> (i32, i32) {
    %c0_i32 = arith.constant 0 : i32
    %c0_i32_0 = arith.constant 0 : i32
    %c0_i32_1 = arith.constant 0 : i32
    return %c0_i32, %c0_i32_0 : i32, i32
  }
  func.func @transform_5(%arg0: i32, %arg1: memref<16xi32, #tpu.memory_space<smem>>) -> (i32, i32) {
    %c0_i32 = arith.constant 0 : i32
    %c0_i32_0 = arith.constant 0 : i32
    %c0_i32_1 = arith.constant 0 : i32
    return %c0_i32, %c0_i32_0 : i32, i32
  }
  func.func @transform_6(%arg0: i32, %arg1: memref<16xi32, #tpu.memory_space<smem>>) -> (i32, i32) {
    %c0_i32 = arith.constant 0 : i32
    %c0_i32_0 = arith.constant 0 : i32
    return %arg0, %c0_i32 : i32, i32
  }
}

</mosaic_0001>

<bundles_post_ra>
// kernel: tpu_custom_call.1
= control target key start
LH: loop header
LB: loop body
LE: loop exit
PB: predicated region body
PF: predicated region fallthrough
CT: control target
= control target key end

     0   :  { %s651_s0 = inlined_call_operand.hbm [shape: s32[16], index: 0, kind: input, shape index: {}]   ;;  %s652_s1 = inlined_call_operand.vmem [shape: s32[16,1], index: 1, kind: input, shape index: {}]   ;;  %s653_s2 = inlined_call_operand.hbm [shape: f32[16,128], index: 2, kind: input, shape index: {}]   ;;  %s654_s3 = inlined_call_operand.hbm [shape: f32[30522,128], index: 3, kind: input, shape index: {}]   ;;  %s655_s4 = inlined_call_operand.hbm [shape: f32[2,128], index: 4, kind: input, shape index: {}]   ;;  %s656_s5 = inlined_call_operand.hbm [shape: f32[1,128], index: 5, kind: input, shape index: {}]   ;;  %s657_s6 = inlined_call_operand.hbm [shape: f32[1,128], index: 6, kind: input, shape index: {}]   ;;  %s658_s7 = inlined_call_operand.hbm [shape: f32[16,128], index: 7, kind: output, shape index: {}]  }
   0x1   :  { %s312_s26 = scalar_lea.hbm %s651_s0, 16 }
   0x2   :  { %p313_p0 = scmp.ne.s32.totalorder %s651_s0, %s312_s26  ;;  %p316_p1 = scmp.lt.u32.totalorder %s312_s26, %s651_s0 }
   0x4   :  { %p318_p2 = pnand %p316_p1, %p313_p0 }
   0x6   :  { %321 = shalt.err (!%p318_p2)  }
   0x7   :  { %s472_s8 = smov [#allocation4]  }
   0x8   :  { %13 = dma.hbm_to_smem %s651_s0, 16, %s472_s8, [#allocation3] }
   0x9   :  { %458 = dma.done.wait [#allocation3], 16 }
   0xa   :  { %459 = vsyncadd [#allocation3], 4294967280 }
   0xb   :  { %15 = sfence }
   0xc   :  { %16 = vsyncpa [#allocation6], 0 }
   0xd   :  { %17 = vsyncpa [#allocation9], 0 }
   0xe   :  { %18 = vsyncpa [#allocation12], 0 }
   0xf   :  { %19 = vsyncpa [#allocation7], 0  ;;  %s473_s11 = smov [#allocation8]   ;;  %s474_s13 = smov [#allocation11]  }
  0x10   :  { %s39_s12 = sshll.u32 %s473_s11, 4  ;;  %s62_s14 = sshll.u32 %s474_s13, 4  ;;  %s40_s12 = int_to_ptr.vmem [resolvable:$true] %s39_s12  ;;  %s534_s14 = int_to_ptr.vmem [resolvable:$true] %s62_s14 }
  0x11   :  { %s322_s17 = scalar_lea.hbm %s654_s3, 488448 }
  0x12   :  { %p323_p3 = scmp.ne.s32.totalorder %s654_s3, %s322_s17  ;;  %p326_p4 = scmp.lt.u32.totalorder %s322_s17, %s654_s3 }
  0x14   :  { %p328_p5 = pnand %p326_p4, %p323_p3 }
  0x16   :  { %331 = shalt.err (!%p328_p5)
}
  0x17   :  { %s332_s21 = scalar_lea.vmem %s40_s12, 488448  ;;  %p337_p7 = scmp.lt.s32.totalorder %s40_s12, %s40_s12 }
  0x18   :  { %p333_p6 = scmp.ne.s32.totalorder %s40_s12, %s332_s21  ;;  %p338_p8 = scmp.lt.s32.totalorder %s332_s21, %s332_s21 }
  0x1a   :  { %p339_p9 = por %p338_p8, %p337_p7 }
  0x1c   :  { %p340_p10 = pnand %p339_p9, %p333_p6 }
  0x1e   :  { %343 = shalt.err (!%p340_p10)
}
  0x1f   :  { %s475_s22 = smov 128   ;;  %s476_s23 = smov 8  }
  0x20   :  { %45 = dma.hbm_to_vmem [thread:$0]  %s654_s3, 488448, %s40_s12, [#allocation9], %s475_s22, %s475_s22, %s476_s23  }
  0x21   :  { %s344_s28 = scalar_lea.hbm %s656_s5, 16 }
  0x22   :  { %p345_p11 = scmp.ne.s32.totalorder %s656_s5, %s344_s28  ;;  %p348_p12 = scmp.lt.u32.totalorder %s344_s28, %s656_s5 }
  0x24   :  { %p350_p13 = pnand %p348_p12, %p345_p11 }
  0x26   :  { %353 = shalt.err (!%p350_p13)
}
  0x27   :  { %s354_s10 = scalar_lea.vmem %s534_s14, 16  ;;  %s358_s3 = scalar_lea.vmem %s534_s14, 32 }
  0x28   :  { %p355_p0 = scmp.ne.s32.totalorder %s534_s14, %s354_s10  ;;  %p359_p1 = scmp.lt.s32.totalorder %s534_s14, %s534_s14 }
  0x29   :  { %p360_p2 = scmp.lt.s32.totalorder %s358_s3, %s354_s10 }
  0x2b   :  { %p361_p3 = por %p360_p2, %p359_p1 }
  0x2d   :  { %p362_p4 = pnand %p361_p3, %p355_p0 }
  0x2f   :  { %365 = shalt.err (!%p362_p4)
}
  0x30   :  { %65 = dma.hbm_to_vmem [thread:$0]  %s656_s5, 16, %s534_s14, [#allocation12]  }
  0x31   :  { %s477_s13 = smov [#allocation5]   ;;  %s478_s16 = smov [#allocation10]  }
  0x32   :  { %s27_s15 = sshll.u32 %s477_s13, 4  ;;  %s52_s17 = sshll.u32 %s478_s16, 4  ;;  %s28_s15 = int_to_ptr.vmem [resolvable:$true] %s27_s15  ;;  %s53_s17 = int_to_ptr.vmem [resolvable:$true] %s52_s17 }
  0x33   :  { %s366_s19 = scalar_lea.hbm %s653_s2, 256 }
  0x34   :  { %p367_p5 = scmp.ne.s32.totalorder %s653_s2, %s366_s19  ;;  %p370_p6 = scmp.lt.u32.totalorder %s366_s19, %s653_s2 }
  0x36   :  { %p372_p7 = pnand %p370_p6, %p367_p5 }
  0x38   :  { %375 = shalt.err (!%p372_p7)
}
  0x39   :  { %s376_s5 = scalar_lea.vmem %s28_s15, 256  ;;  %p381_p9 = scmp.lt.s32.totalorder %s28_s15, %s28_s15 }
  0x3a   :  { %p377_p8 = scmp.ne.s32.totalorder %s28_s15, %s376_s5  ;;  %p382_p10 = scmp.lt.s32.totalorder %s376_s5, %s376_s5 }
  0x3c   :  { %p383_p11 = por %p382_p10, %p381_p9 }
  0x3e   :  { %p384_p12 = pnand %p383_p11, %p377_p8 }
  0x40   :  { %387 = shalt.err (!%p384_p12)
}
  0x41   :  { %33 = dma.hbm_to_vmem [thread:$0]  %s653_s2, 256, %s28_s15, [#allocation6], %s475_s22, %s475_s22, %s476_s23  }
  0x42   :  { %s388_s29 = scalar_lea.hbm %s655_s4, 32 }
  0x43   :  { %p389_p13 = scmp.ne.s32.totalorder %s655_s4, %s388_s29  ;;  %p392_p0 = scmp.lt.u32.totalorder %s388_s29, %s655_s4 }
  0x45   :  { %p394_p1 = pnand %p392_p0, %p389_p13 }
  0x47   :  { %397 = shalt.err (!%p394_p1)
}
  0x48   :  { %s398_s3 = scalar_lea.vmem %s53_s17, 32  ;;  %p403_p3 = scmp.lt.s32.totalorder %s53_s17, %s53_s17 }
  0x49   :  { %p399_p2 = scmp.ne.s32.totalorder %s53_s17, %s398_s3  ;;  %p404_p4 = scmp.lt.s32.totalorder %s398_s3, %s398_s3 }
  0x4b   :  { %p405_p5 = por %p404_p4, %p403_p3 }
  0x4d   :  { %p406_p6 = pnand %p405_p5, %p399_p2 }
  0x4f   :  { %409 = shalt.err (!%p406_p6)
}
  0x50   :  { %55 = dma.hbm_to_vmem [thread:$0]  %s655_s4, 32, %s53_s17, [#allocation9]  }
  0x51   :  { %s479_s12 = smov [#allocation13]   ;;  %s410_s18 = scalar_lea.hbm %s657_s6, 16 }
  0x52   :  { %s72_s13 = sshll.u32 %s479_s12, 4  ;;  %p411_p7 = scmp.ne.s32.totalorder %s657_s6, %s410_s18  ;;  %s73_s13 = int_to_ptr.vmem [resolvable:$true] %s72_s13 }
  0x53   :  { %p414_p8 = scmp.lt.u32.totalorder %s410_s18, %s657_s6 }
  0x55   :  { %p416_p9 = pnand %p414_p8, %p411_p7 }
  0x57   :  { %419 = shalt.err (!%p416_p9)
}
  0x58   :  { %s420_s24 = scalar_lea.vmem %s73_s13, 16  ;;  %s424_s4 = scalar_lea.vmem %s73_s13, 32 }
  0x59   :  { %p421_p10 = scmp.ne.s32.totalorder %s73_s13, %s420_s24  ;;  %p425_p11 = scmp.lt.s32.totalorder %s73_s13, %s73_s13 }
  0x5a   :  { %p426_p12 = scmp.lt.s32.totalorder %s424_s4, %s420_s24 }
  0x5c   :  { %p427_p13 = por %p426_p12, %p425_p11 }
  0x5e   :  { %p428_p0 = pnand %p427_p13, %p421_p10 }
  0x60   :  { %431 = shalt.err (!%p428_p0)
}
  0x61   :  { %75 = dma.hbm_to_vmem [thread:$0]  %s657_s6, 16, %s73_s13, [#allocation12]  }
  0x62   :  { %460 = dma.done.wait [#allocation6], 256  }
  0x63   :  { %461 = vsyncadd [#allocation6], 4294967040 }
  0x64   :  { %462 = dma.done.wait [#allocation9], 488480  }
  0x65   :  { %463 = vsyncadd [#allocation9], 4294478816 }
  0x66   :  { %464 = dma.done.wait [#allocation12], 32  }
  0x67   :  { %465 = vsyncadd [#allocation12], 4294967264  ;;  %s608_s5 = smov 0  }
  0x68 LB: > { %s614_s14 = sshll.u32 %s470_s5, 3  ;;  %s470_s5 = sphi %s608_s5, %s97_s5  }
  0x69   : > { %p284_p1 = scmp.ge.s32.totalorder %s614_s14, 16 }
  0x6a   : > { %s104_s6 = sld [smem:[#allocation4 + %s614_s14]] (!%p284_p1)  ;;  %s107_s26 = sadd.s32 (!%p284_p1), 1, %s614_s14  ;;  %vm156_vm0 = vcmask (!%p284_p1), 1040384   ;;  %vm158_vm1 = vcmask (!%p284_p1), 1041408   ;;  %vm160_vm2 = vcmask (!%p284_p1), 1042432   ;;  %vm162_vm3 = vcmask (!%p284_p1), 1043456  }
  0x6b   : > { %103 = sbr.rel (%p284_p1) target bundleno = 126 (0x7e), region = 56  ;;  %s108_s27 = sld [smem:[#allocation4 + %s107_s26]] (!%p284_p1)  ;;  %vm164_vm4 = vcmask (!%p284_p1), 1044480   ;;  %vm166_vm5 = vcmask (!%p284_p1), 1045504   ;;  %vm168_vm6 = vcmask (!%p284_p1), 1046528  }
  0x6c   : > { %s111_s28 = sadd.s32 (!%p284_p1), 2, %s614_s14  ;;  %s115_s30 = sadd.s32 (!%p284_p1), 3, %s614_s14 }
  0x6d   : > { %s112_s29 = sld [smem:[#allocation4 + %s111_s28]] (!%p284_p1)  ;;  %s119_s9 = sadd.s32 (!%p284_p1), 4, %s614_s14 }
  0x6e   : > { %s116_s8 = sld [smem:[#allocation4 + %s115_s30]] (!%p284_p1)  ;;  %s123_s3 = sadd.s32 (!%p284_p1), 5, %s614_s14 }
  0x6f   : > { %s120_s10 = sld [smem:[#allocation4 + %s119_s9]] (!%p284_p1)  ;;  %s127_s11 = sadd.s32 (!%p284_p1), 6, %s614_s14 }
  0x70   : > { %s124_s2 = sld [smem:[#allocation4 + %s123_s3]] (!%p284_p1)  ;;  %s131_s13 = sadd.s32 (!%p284_p1), 7, %s614_s14 }
  0x71   : > { %s128_s12 = sld [smem:[#allocation4 + %s127_s11]] (!%p284_p1)  ;;  %s105_s15 = scalar_lea.vmem (!%p284_p1), [#allocation8], %s104_s6 }
  0x72   : > { %v106_v0 = vld [vmem:[%s105_s15] sm:$0x1]  ;;  %s109_s16 = scalar_lea.vmem [#allocation8], %s108_s27  ;;  %s132_s18 = sld [smem:[#allocation4 + %s131_s13]] }
  0x73   : > { %v110_v1 = vld [vmem:[%s109_s16] sm:$0x1]  ;;  %s113_s0 = scalar_lea.vmem [#allocation8], %s112_s29  ;;  %s170_s17 = scalar_lea.vmem [#allocation2], %s614_s14 }
  0x74   : > { %v114_v2 = vld [vmem:[%s113_s0] sm:$0x1]  ;;  %v136_v3 = vrot.slane %v110_v1, 7  ;;  %s117_s19 = scalar_lea.vmem [#allocation8], %s116_s8 }
  0x75   : > { %v118_v4 = vld [vmem:[%s117_s19] sm:$0x1]  ;;  %v139_v5 = vrot.slane %v114_v2, 6  ;;  %s121_s20 = scalar_lea.vmem [#allocation8], %s120_s10 }
  0x76   : > { %v122_v6 = vld [vmem:[%s121_s20] sm:$0x1]  ;;  %v142_v7 = vrot.slane %v118_v4, 5  ;;  %v157_v8 = vsel %vm156_vm0, %v106_v0, %v136_v3  ;;  %s125_s21 = scalar_lea.vmem [#allocation8], %s124_s2 }
  0x77   : > { %v126_v9 = vld [vmem:[%s125_s21] sm:$0x1]  ;;  %v145_v10 = vrot.slane %v122_v6, 4  ;;  %v159_v11 = vsel %vm158_vm1, %v157_v8, %v139_v5  ;;  %s129_s24 = scalar_lea.vmem [#allocation8], %s128_s12 }
  0x78   : > { %v130_v12 = vld [vmem:[%s129_s24] sm:$0x1]  ;;  %v148_v13 = vrot.slane %v126_v9, 3  ;;  %v161_v14 = vsel %vm160_vm2, %v159_v11, %v142_v7  ;;  %s133_s4 = scalar_lea.vmem [#allocation8], %s132_s18 }
  0x79   : > { %v151_v15 = vrot.slane %v130_v12, 2  ;;  %v163_v16 = vsel %vm162_vm3, %v161_v14, %v145_v10  ;;  %v134_v17 = vld [vmem:[%s133_s4] sm:$0x1] }
  0x7a   : > { %v165_v18 = vsel %vm164_vm4, %v163_v16, %v148_v13  ;;  %v154_v19 = vrot.slane %v134_v17, 1 }
  0x7b   : > { %v167_v20 = vsel %vm166_vm5, %v165_v18, %v151_v15 }
  0x7c   : > { %v169_v21 = vsel %vm168_vm6, %v167_v20, %v154_v19 }
  0x7d   : > { %171 = vst [vmem:[%s170_s17] sm:$0xff] %v169_v21 }
  0x7e PF: > { %s97_s5 = sadd.s32 1, %s470_s5  }
  0x7f   : > { %p94_p2 = scmp.ge.s32.totalorder %s97_s5, 2  }
  0x80   :  { %v178_v22 = vld [vmem:[%s652_s1] sm:$0xff] (%p94_p2)  ;;  %v179_v23 = vld [vmem:[%s652_s1 + $0x8] sm:$0xff] (%p94_p2)  ;;  %v480_v24 = vmov (%p94_p2), 0   ;;  %v174_v28 = vld [vmem:[#allocation5] sm:$0xff] (%p94_p2)  ;;  %s481_s1 = smov (%p94_p2), [#allocation14]  }
  0x81   :  { %96 = sbr.rel (!%p94_p2) target bundleno = 104 (0x68), region = 84  ;;  %307 = vset.pattern.permute.xlu0 (%p94_p2), %v480_v24  ;;  %vm180_vm7 = vcmp.eq.s32.totalorder (%p94_p2), %v178_v22, 0  ;;  %vm181_vm8 = vcmp.eq.s32.totalorder (%p94_p2), %v179_v23, 0  ;;  %v285_v30 = vld [vmem:[#allocation10] ss:$0 sm:$0xff] (%p94_p2)  ;;  %v175_v34 = vld [vmem:[#allocation5 + $0x8] sm:$0xff] (%p94_p2) }
  0x82   :  { %v182_v25 = vsel (%p94_p2), %vm180_vm7, 1, %v480_v24  ;;  %v183_v26 = vsel (%p94_p2), %vm181_vm8, 1, %v480_v24  ;;  %v286_v31 = vld [vmem:[#allocation10 + $0x1] ss:$0 sm:$0xff] (%p94_p2)  ;;  %v287_v56 = vld [vmem:[#allocation11] ss:$0 sm:$0xff] (%p94_p2) }
  0x83   :  { %185 = vperm.xlu0 (%p94_p2), %307, %v182_v25   ;;  %v288_v58 = vld [vmem:[#allocation13] ss:$0 sm:$0xff] (%p94_p2)  ;;  %s254_s5 = sshll.u32 (%p94_p2), %s481_s1, 4  ;;  %s255_s5 = int_to_ptr.vmem [resolvable:$true] %s254_s5 }
  0x84   :  { %v172_v27 = vld [vmem:[#allocation2] sm:$0xff] (%p94_p2)  ;;  %v173_v33 = vld [vmem:[#allocation2 + $0x8] sm:$0xff] (%p94_p2)  ;;  %s432_s14 = scalar_lea.vmem (%p94_p2), %s255_s5, 256  ;;  %p437_p4 = scmp.lt.s32.totalorder (%p94_p2), %s255_s5, %s255_s5 }
  0x85   :  { %v176_v29 = vadd.f32 (%p94_p2), %v174_v28, %v172_v27  ;;  %v177_v37 = vadd.f32 (%p94_p2), %v175_v34, %v173_v33  ;;  %p433_p3 = scmp.ne.s32.totalorder (%p94_p2), %s255_s5, %s432_s14  ;;  %p438_p5 = scmp.lt.s32.totalorder (%p94_p2), %s432_s14, %s432_s14 }
  0x87   :  { %188 = vperm.xlu0 (%p94_p2), %307, %v183_v26   ;;  %p439_p6 = por (%p94_p2), %p438_p5, %p437_p4 }
  0x89   :  { %p440_p7 = pnand %p439_p6, %p433_p3 }
 0x102   :  { %v186_v32 = vpop.permute.xlu0 %185 }
 0x103   :  { %vm190_vm9 = vcmp.eq.s32.totalorder %v186_v32, 1 }
 0x104   :  { %v202_v35 = vsel %vm190_vm9, %v285_v30, %v286_v31 }
 0x105   :  { %v204_v36 = vadd.f32 %v202_v35, %v176_v29 }
 0x106   :  { %v189_v38 = vpop.permute.xlu0 %188 }
 0x107   :  { %vm191_vm10 = vcmp.eq.s32.totalorder %v189_v38, 1  ;;  %206 = vadd.xlane.f32.xlu1 %v204_v36 }
 0x108   :  { %v203_v39 = vsel %vm191_vm10, %v285_v30, %v286_v31 }
 0x109   :  { %v205_v40 = vadd.f32 %v203_v39, %v177_v37 }
 0x10b   :  { %208 = vadd.xlane.f32.xlu1 %v205_v40 }
 0x194   :  { %v207_v41 = vpop.xlane.xlu1 %206 }
 0x195   :  { %v211_v42 = vmul.f32 0.0078125, %v207_v41 }
 0x197   :  { %v213_v43 = vsub.f32 %v204_v36, %v211_v42 }
 0x198   :  { %v209_v44 = vpop.xlane.xlu1 %208 }
 0x199   :  { %v212_v45 = vmul.f32 0.0078125, %v209_v44  ;;  %v215_v46 = vmul.f32 %v213_v43, %v213_v43 }
 0x19b   :  { %v214_v47 = vsub.f32 %v205_v40, %v212_v45  ;;  %217 = vadd.xlane.f32.xlu0 %v215_v46 }
 0x19d   :  { %v216_v48 = vmul.f32 %v214_v47, %v214_v47 }
 0x19f   :  { %219 = vadd.xlane.f32.xlu1 %v216_v48 }
 0x228   :  { %v218_v49 = vpop.xlane.xlu0 %217 }
 0x229   :  { %v221_v50 = vmul.f32 0.0078125, %v218_v49 }
 0x22b   :  { %v223_v51 = vadd.f32 1e-12, %v221_v50 }
 0x22c   :  { %v220_v52 = vpop.xlane.xlu1 %219 }
 0x22d   :  { %308 = vrsqrt.f32 %v223_v51  ;;  %v222_v53 = vmul.f32 0.0078125, %v220_v52 }
 0x22f   :  { %v224_v54 = vadd.f32 1e-12, %v222_v53 }
 0x231   :  { %310 = vrsqrt.f32 %v224_v54 }
 0x237   :  { %v309_v55 = vpop.eup %308 }
 0x238   :  { %v227_v57 = vmul.f32 %v309_v55, %v213_v43 }
 0x23a   :  { %v236_v59 = vmul.f32 %v287_v56, %v227_v57 }
 0x23b   :  { %v311_v60 = vpop.eup %310 }
 0x23c   :  { %v228_v61 = vmul.f32 %v311_v60, %v214_v47  ;;  %v245_v62 = vadd.f32 %v288_v58, %v236_v59 }
 0x23e   :  { %v237_v63 = vmul.f32 %v287_v56, %v228_v61  ;;  %247 = vst [vmem:[#allocation14] sm:$0xff] %v245_v62 }
 0x240   :  { %v246_v0 = vadd.f32 %v288_v58, %v237_v63 }
 0x242   :  { %248 = vst [vmem:[#allocation14 + $0x8] sm:$0xff] %v246_v0 }
 0x243   :  { %443 = shalt.err (!%p440_p7)
}
 0x244   :  { %s444_s30 = scalar_lea.hbm %s658_s7, 256 }
 0x245   :  { %p445_p8 = scmp.ne.s32.totalorder %s658_s7, %s444_s30  ;;  %p448_p9 = scmp.lt.u32.totalorder %s444_s30, %s658_s7 }
 0x247   :  { %p450_p10 = pnand %p448_p9, %p445_p8 }
 0x249   :  { %453 = shalt.err (!%p450_p10)
}
 0x24a   :  { %260 = dma.vmem_to_hbm [thread:$0]  %s255_s5, 256, %s658_s7, [#allocation7], %s475_s22, %s475_s22, %s476_s23  }
 0x24b   :  { %466 = dma.done.wait [#allocation7], 256  }
 0x24c   :  { %467 = vsyncadd [#allocation7], 4294967040 }
 0x24d   :  { %264 = vsyncpa [#allocation6], 1 }
 0x24e   :  { %265 = vsyncpa [#allocation9], 1 }
 0x24f   :  { %266 = vsyncpa [#allocation12], 1 }
 0x250   :  { %267 = vsyncpa [#allocation7], 1 }

</bundles_post_ra>
